<compile_context>
chip_gen: v6e
topology: v6e:2x2x1
jax: 0.10.0
libtpu: 0.0.40
codegen_flags: <defaults>
</compile_context>

<pallas_src>
import jax
import jax.numpy as jnp
from jax.experimental import pallas as pl
from jax.experimental.pallas import tpu as pltpu

IGNORE_INDEX = 255


def _ce_kernel(x_ref, t_ref, out_ref):
    # x_ref: (1, C, tile_hw)  logits
    # t_ref: (1, 1, tile_hw)  int32 targets
    # out_ref: (1, 1, 1, 128) partial [sum, count, 0, ...]
    x = x_ref[0].astype(jnp.float32)          # (C, tile_hw)
    t = t_ref[0]                              # (1, tile_hw)

    # log-sum-exp over the channel (sublane) axis
    m = jnp.max(x, axis=0, keepdims=True)                              # (1, tile_hw)
    lse = jnp.log(jnp.sum(jnp.exp(x - m), axis=0, keepdims=True)) + m  # (1, tile_hw)

    # gather the target-class logit via one-hot select (no logp tile needed)
    cls = jax.lax.broadcasted_iota(jnp.int32, x.shape, 0)              # (C, tile_hw)
    picked = jnp.sum(jnp.where(cls == t, x, 0.0), axis=0, keepdims=True)

    valid = t != IGNORE_INDEX                                          # (1, tile_hw)
    # -log_softmax[target] = lse - logit[target]; padded / ignored pixels -> 0
    loss = jnp.where(valid, lse - picked, 0.0)

    loss_sum = jnp.sum(loss)
    valid_cnt = jnp.sum(valid.astype(jnp.float32))

    lane = jax.lax.broadcasted_iota(jnp.int32, (1, 128), 1)
    partial = jnp.where(lane == 0, loss_sum,
                        jnp.where(lane == 1, valid_cnt, 0.0))
    out_ref[...] = partial.reshape(out_ref.shape)


def cross_entropy_loss_2d(inputs, targets, *, max_tile_hw=None,
                          block_bytes=4 * 1024 * 1024):
    """inputs: (N, C, H, W) float logits; targets: (N, H, W) int.

    Returns the mean of -log_softmax(inputs)[target] over pixels whose target
    != 255 (size_average=True, weight=None). If every pixel is ignored the
    result is nan (same as PyTorch's 0/0).
    """
    n, c, h, w = inputs.shape
    hw = h * w

    x = inputs.reshape(n, c, hw)                       # free reshape, stays NCHW
    t = targets.astype(jnp.int32).reshape(n, 1, hw)

    # Lane-dense pixel tile: multiple of 128, capped so the f32 logits block is
    # ~block_bytes (4 MiB -> 2x double-buffered = 8 MiB, safe within the 32 MiB
    # scoped VMEM on v5e/v6e/v7x).
    cap = max(128, (block_bytes // (c * 4)) // 128 * 128)
    if max_tile_hw is not None:
        cap = min(cap, max(128, max_tile_hw // 128 * 128))
    tile_hw = min(cap, ((hw + 127) // 128) * 128)

    # Pad the pixel axis to a multiple of tile_hw; padded targets are
    # IGNORE_INDEX so they contribute nothing.
    hw_pad = ((hw + tile_hw - 1) // tile_hw) * tile_hw
    if hw_pad != hw:
        x = jnp.pad(x, ((0, 0), (0, 0), (0, hw_pad - hw)))
        t = jnp.pad(t, ((0, 0), (0, 0), (0, hw_pad - hw)),
                    constant_values=IGNORE_INDEX)

    nblk = hw_pad // tile_hw
    grid = (n, nblk)

    partials = pl.pallas_call(
        _ce_kernel,
        out_shape=jax.ShapeDtypeStruct((n, nblk, 1, 128), jnp.float32),
        grid_spec=pltpu.PrefetchScalarGridSpec(
            num_scalar_prefetch=0,
            grid=grid,
            in_specs=[
                pl.BlockSpec((1, c, tile_hw), lambda b, i: (b, 0, i)),
                pl.BlockSpec((1, 1, tile_hw), lambda b, i: (b, 0, i)),
            ],
            out_specs=pl.BlockSpec((1, 1, 1, 128), lambda b, i: (b, i, 0, 0)),
        ),
        compiler_params=pltpu.CompilerParams(
            dimension_semantics=("parallel", "parallel"),
            vmem_limit_bytes=32 * 1024 * 1024,
        ),
    )(x, t)

    loss_sum = jnp.sum(partials[:, :, 0, 0])
    valid_cnt = jnp.sum(partials[:, :, 0, 1])
    return loss_sum / valid_cnt


def _reference(inputs, targets):
    n, c, h, w = inputs.shape
    x = jnp.transpose(inputs, (0, 2, 3, 1)).reshape(-1, c).astype(jnp.float32)
    t = targets.reshape(-1).astype(jnp.int32)
    logp = jax.nn.log_softmax(x, axis=-1)
    valid = t != IGNORE_INDEX
    t_safe = jnp.where(valid, t, 0)
    picked = jnp.take_along_axis(logp, t_safe[:, None], axis=-1)[:, 0]
    losses = jnp.where(valid, -picked, 0.0)
    return jnp.sum(losses) / jnp.sum(valid.astype(jnp.float32))


if __name__ == "__main__":
    key = jax.random.PRNGKey(0)
    k1, k2, k3 = jax.random.split(key, 3)

    N, C, H, W = 2, 4, 16, 16
    inputs = jax.random.normal(k1, (N, C, H, W), dtype=jnp.float32)
    targets = jax.random.randint(k2, (N, H, W), 0, C, dtype=jnp.int32)
    # sprinkle in some ignore_index pixels
    ignore_mask = jax.random.uniform(k3, (N, H, W)) < 0.1
    targets = jnp.where(ignore_mask, IGNORE_INDEX, targets)

    loss = cross_entropy_loss_2d(inputs, targets)
    jax.block_until_ready(loss)

    ref = _reference(inputs, targets)
    assert jnp.allclose(loss, ref, rtol=1e-5, atol=1e-5), (loss, ref)

    # also exercise the padding path (H*W not a multiple of the tile)
    H2, W2 = 13, 11
    inputs2 = jax.random.normal(k1, (N, C, H2, W2), dtype=jnp.float32)
    targets2 = jax.random.randint(k2, (N, H2, W2), 0, C, dtype=jnp.int32)
    loss2 = cross_entropy_loss_2d(inputs2, targets2)
    jax.block_until_ready(loss2)
    ref2 = _reference(inputs2, targets2)
    assert jnp.allclose(loss2, ref2, rtol=1e-5, atol=1e-5), (loss2, ref2)

    print("KERNEL_OK")
</pallas_src>

<mosaic_0001>
module attributes {stable_mosaic.version = 11 : i64} {
  func.func @_ce_kernel(%arg0: i32, %arg1: i32, %arg2: memref<1x4x256xf32, #tpu.memory_space<vmem>>, %arg3: memref<1x1x256xi32, #tpu.memory_space<vmem>>, %arg4: memref<1x1x1x128xf32, #tpu.memory_space<vmem>>) attributes {dimension_semantics = [#tpu.dimension_semantics<parallel>, #tpu.dimension_semantics<parallel>], iteration_bounds = array<i64: 2, 1>, scalar_prefetch = 0 : i64, scratch_operands = 0 : i64, tpu.core_type = #tpu.core_type<tc>, window_params = [{transform_indices = @transform_0, window_bounds = array<i64: 1, 4, 256>}, {transform_indices = @transform_1, window_bounds = array<i64: 1, 1, 256>}, {transform_indices = @transform_2, window_bounds = array<i64: 1, 1, 1, 128>}]} {
    %c0 = arith.constant 0 : index
    %c0_0 = arith.constant 0 : index
    %c0_1 = arith.constant 0 : index
    %0 = vector.load %arg2[%c0, %c0_0, %c0_1] : memref<1x4x256xf32, #tpu.memory_space<vmem>>, vector<1x4x256xf32>
    %1 = vector.shape_cast %0 : vector<1x4x256xf32> to vector<4x256xf32>
    %c0_2 = arith.constant 0 : index
    %c0_3 = arith.constant 0 : index
    %c0_4 = arith.constant 0 : index
    %2 = vector.load %arg3[%c0_2, %c0_3, %c0_4] : memref<1x1x256xi32, #tpu.memory_space<vmem>>, vector<1x1x256xi32>
    %3 = vector.shape_cast %2 : vector<1x1x256xi32> to vector<1x256xi32>
    %cst = arith.constant dense<0xFF800000> : vector<256xf32>
    %4 = vector.multi_reduction <maximumf>, %1, %cst [0] : vector<4x256xf32> to vector<256xf32>
    %5 = vector.shape_cast %4 : vector<256xf32> to vector<1x256xf32>
    %6 = vector.broadcast %5 : vector<1x256xf32> to vector<4x256xf32>
    %7 = arith.subf %1, %6 : vector<4x256xf32>
    %8 = math.exp %7 : vector<4x256xf32>
    %cst_5 = arith.constant dense<0.000000e+00> : vector<256xf32>
    %9 = vector.multi_reduction <add>, %8, %cst_5 [0] : vector<4x256xf32> to vector<256xf32>
    %10 = vector.shape_cast %9 : vector<256xf32> to vector<1x256xf32>
    %11 = math.log %10 : vector<1x256xf32>
    %12 = arith.addf %11, %5 : vector<1x256xf32>
    %13 = tpu.iota {dimensions = array<i32: 0>} : vector<4x256xi32>
    %14 = vector.broadcast %3 : vector<1x256xi32> to vector<4x256xi32>
    %15 = arith.cmpi eq, %13, %14 : vector<4x256xi32>
    %cst_6 = arith.constant 0.000000e+00 : f32
    %16 = vector.broadcast %cst_6 : f32 to vector<4x256xf32>
    %17 = arith.select %15, %1, %16 : vector<4x256xi1>, vector<4x256xf32>
    %cst_7 = arith.constant dense<0.000000e+00> : vector<256xf32>
    %18 = vector.multi_reduction <add>, %17, %cst_7 [0] : vector<4x256xf32> to vector<256xf32>
    %19 = vector.shape_cast %18 : vector<256xf32> to vector<1x256xf32>
    %c255_i32 = arith.constant 255 : i32
    %20 = vector.broadcast %c255_i32 : i32 to vector<1x256xi32>
    %21 = arith.cmpi ne, %3, %20 : vector<1x256xi32>
    %22 = arith.subf %12, %19 : vector<1x256xf32>
    %cst_8 = arith.constant 0.000000e+00 : f32
    %23 = vector.broadcast %cst_8 : f32 to vector<1x256xf32>
    %24 = arith.select %21, %22, %23 : vector<1x256xi1>, vector<1x256xf32>
    %25 = vector.shape_cast %24 : vector<1x256xf32> to vector<1x1x256xf32>
    %cst_9 = arith.constant dense<0.000000e+00> : vector<1xf32>
    %26 = vector.multi_reduction <add>, %25, %cst_9 [1, 2] : vector<1x1x256xf32> to vector<1xf32>
    %27 = vector.shape_cast %26 : vector<1xf32> to vector<1x1x1xf32>
    %28 = vector.extract %27[0, 0, 0] : f32 from vector<1x1x1xf32>
    %29 = arith.extui %21 : vector<1x256xi1> to vector<1x256xi32>
    %30 = arith.sitofp %29 : vector<1x256xi32> to vector<1x256xf32>
    %31 = vector.shape_cast %30 : vector<1x256xf32> to vector<1x1x256xf32>
    %cst_10 = arith.constant dense<0.000000e+00> : vector<1xf32>
    %32 = vector.multi_reduction <add>, %31, %cst_10 [1, 2] : vector<1x1x256xf32> to vector<1xf32>
    %33 = vector.shape_cast %32 : vector<1xf32> to vector<1x1x1xf32>
    %34 = vector.extract %33[0, 0, 0] : f32 from vector<1x1x1xf32>
    %35 = tpu.iota {dimensions = array<i32: 1>} : vector<1x128xi32>
    %c0_i32 = arith.constant 0 : i32
    %36 = vector.broadcast %c0_i32 : i32 to vector<1x128xi32>
    %37 = arith.cmpi eq, %35, %36 : vector<1x128xi32>
    %c1_i32 = arith.constant 1 : i32
    %38 = vector.broadcast %c1_i32 : i32 to vector<1x128xi32>
    %39 = arith.cmpi eq, %35, %38 : vector<1x128xi32>
    %cst_11 = arith.constant 0.000000e+00 : f32
    %40 = vector.broadcast %34 : f32 to vector<1x128xf32>
    %41 = vector.broadcast %cst_11 : f32 to vector<1x128xf32>
    %42 = arith.select %39, %40, %41 : vector<1x128xi1>, vector<1x128xf32>
    %43 = vector.broadcast %28 : f32 to vector<1x128xf32>
    %44 = arith.select %37, %43, %42 : vector<1x128xi1>, vector<1x128xf32>
    %45 = vector.shape_cast %44 : vector<1x128xf32> to vector<1x1x1x128xf32>
    %c0_12 = arith.constant 0 : index
    %c0_13 = arith.constant 0 : index
    %c0_14 = arith.constant 0 : index
    %c0_15 = arith.constant 0 : index
    %46 = vector.load %arg4[%c0_12, %c0_13, %c0_14, %c0_15] : memref<1x1x1x128xf32, #tpu.memory_space<vmem>>, vector<1x1x1x128xf32>
    tpu.vector_store %arg4[%c0_12, %c0_13, %c0_14, %c0_15], %45 {strides = array<i32>} : memref<1x1x1x128xf32, #tpu.memory_space<vmem>>, vector<1x1x1x128xf32>,
    return
  }
  func.func @transform_0(%arg0: i32, %arg1: i32) -> (i32, i32, i32) {
    %c0_i32 = arith.constant 0 : i32
    %c0_i32_0 = arith.constant 0 : i32
    return %arg0, %c0_i32, %arg1 : i32, i32, i32
  }
  func.func @transform_1(%arg0: i32, %arg1: i32) -> (i32, i32, i32) {
    %c0_i32 = arith.constant 0 : i32
    %c0_i32_0 = arith.constant 0 : i32
    return %arg0, %c0_i32, %arg1 : i32, i32, i32
  }
  func.func @transform_2(%arg0: i32, %arg1: i32) -> (i32, i32, i32, i32) {
    %c0_i32 = arith.constant 0 : i32
    %c0_i32_0 = arith.constant 0 : i32
    %c0_i32_1 = arith.constant 0 : i32
    return %arg0, %arg1, %c0_i32, %c0_i32_0 : i32, i32, i32, i32
  }
}

</mosaic_0001>

<bundles_post_ra>
// kernel: tpu_custom_call.1
= control target key start
LH: loop header
LB: loop body
LE: loop exit
PB: predicated region body
PF: predicated region fallthrough
CT: control target
= control target key end

     0   :  { %7 = vsyncpa [#allocation3], 0  ;;  %s947_s0 = inlined_call_operand.hbm [shape: f32[2,4,256], index: 0, kind: input, shape index: {}]   ;;  %s948_s1 = inlined_call_operand.hbm [shape: s32[2,1,256], index: 1, kind: input, shape index: {}]   ;;  %s949_s2 = inlined_call_operand.hbm [shape: f32[2,1,1,128], index: 2, kind: output, shape index: {}]  }
   0x1   :  { %9 = vsyncpa [#allocation3 + $0x1], 0 }
   0x2   :  { %10 = vsyncpa [#allocation6], 0 }
   0x3   :  { %12 = vsyncpa [#allocation6 + $0x1], 0 }
   0x4   :  { %13 = vsyncpa [#allocation4], 0 }
   0x5   :  { %15 = vsyncpa [#allocation4 + $0x1], 0  ;;  %s758_s9 = smov 0   ;;  %s760_s10 = smov 0  }
   0x6   :  { %s762_s11 = smov 0   ;;  %s764_s12 = smov 0  }
   0x7   :  { %s766_s13 = smov 0   ;;  %s768_s14 = smov 0  }
   0x8 LB: > { %s497_s15 = sadd.s32 4294967295, %s736_s14   ;;  %s498_s16 = sadd.s32 4294967294, %s736_s14   ;;  %s736_s14 = sphi %s768_s14, %s21_s14   ;;  %s732_s13 = sphi %s766_s13, %s961_s13   ;;  %s728_s12 = sphi %s764_s12, %s960_s12   ;;  %s724_s11 = sphi %s762_s11, %s959_s11   ;;  %s720_s10 = sphi %s760_s10, %s958_s10   ;;  %s716_s9 = sphi %s758_s9, %s957_s9  }
   0x9   : > { %s33_s17 = sadd.s32 1, %s732_s13  ;;  %s42_s18 = sadd.s32 1, %s724_s11 }
   0xa   : > { %p35_p0 = scmp.ge.s32.totalorder %s33_s17, 2  ;;  %p49_p1 = scmp.ne.s32.totalorder %s724_s11, %s720_s10 }
   0xb   : > { %p50_p2 = scmp.eq.s32.totalorder %s736_s14, 0  ;;  %p55_p3 = scmp.ne.s32.totalorder %s720_s10, %s716_s9 }
   0xc   : > { %s963_s17 = smov (%p35_p0, %s33_s17), 0  ;;  %p56_p5 = scmp.eq.s32.totalorder %s497_s15, 0 }
   0xd   : > { %p799_p4 = por %p50_p2, %p49_p1  ;;  %s37_s20 = ssub.s32 %s732_s13, %s963_s17 }
   0xe   : > { %p109_p6 = scmp.eq.s32.totalorder %s497_s15, 1  ;;  %p40_p7 = scmp.eq.s32.totalorder %s37_s20, 0 }
   0xf   : > { %p805_p8 = por %p56_p5, %p55_p3  ;;  %p115_p10 = scmp.eq.s32.totalorder %s498_s16, 1 }
  0x10   : > { %p809_p9 = por %p109_p6, %p49_p1  ;;  %p537_p13 = scmp.lt.s32.totalorder %s736_s14, 2 }
  0x11   : > { %s814_s23 = scalar_select %p40_p7, %s724_s11, %s42_s18  }
  0x12   : > { %p816_p11 = por %p115_p10, %p55_p3  ;;  %s823_s25 = sand.u32 1, %s724_s11  }
  0x13   : > { %s501_s26 = sshll.u32 %s823_s25, 3  ;;  %s514_s27 = sshll.u32 %s732_s13, 7 }
  0x14   : > { %s147_s30 = scalar_lea.hbm %s947_s0, %s514_s27  ;;  %s139_s3 = scalar_lea.vmem [#allocation2], %s501_s26 }
  0x15   : > { %s149_s4 = sshll.u32 %s139_s3, 4  ;;  %p832_p0 = pnand %p537_p13, %p799_p4  ;;  %s150_s4 = int_to_ptr.vmem [resolvable:$true] %s149_s4 }
  0x16   : > { %p507_p1 = scmp.ge.s32.totalorder %s736_s14, 1  ;;  %p175_p2 = scmp.lt.s32.totalorder %s736_s14, 3 }
  0x17   : > { %s136_s6 = scalar_lea.sflag [#allocation3], %s823_s25  ;;  %p598_p3 = pneg %p832_p0 }
  0x18   : > { %s609_s7 = scalar_lea.vmem %s150_s4, 128  ;;  %s738_s8 = smov [#allocation2]  }
  0x19   : > { %p610_p5 = scmp.ne.s32.totalorder %s150_s4, %s609_s7  ;;  %s614_s15 = sshll.u32 %s738_s8, 4  ;;  %s615_s15 = int_to_ptr.vmem [resolvable:$false] %s614_s15 }
  0x1a   : > { %s616_s16 = scalar_lea.vmem %s615_s15, 256  ;;  %p617_p4 = scmp.lt.s32.totalorder %s150_s4, %s615_s15 }
  0x1b   : > { %p612_p6 = pnand %p610_p5, %p598_p3  ;;  %p618_p10 = scmp.lt.s32.totalorder %s616_s16, %s609_s7 }
  0x1d   : > { %p613_p7 = pneg %p612_p6  ;;  %p619_p13 = por %p618_p10, %p617_p4 }
  0x1f   : > { %p620_p12 = pnand %p619_p13, %p613_p7 }
  0x21   : > { %623 = shalt.err (!%p620_p12)
}
  0x22   : > { %529 = dma.hbm_to_vmem [thread:$0]  (!%p832_p0), %s147_s30, 128, %s150_s4, %s136_s6  }
  0x23   : > { %p850_p5 = pnand %p507_p1, %p175_p2  ;;  %s504_s19 = sshll.u32 %s823_s25, 1 }
  0x24   : > { %s515_s20 = sshll.u32 %s732_s13, 5  ;;  %s160_s29 = scalar_lea.vmem [#allocation5], %s504_s19 }
  0x25   : > { %s168_s28 = scalar_lea.hbm %s948_s1, %s515_s20  ;;  %s170_s3 = sshll.u32 %s160_s29, 4  ;;  %s171_s3 = int_to_ptr.vmem [resolvable:$true] %s170_s3 }
  0x26   : > { %s157_s7 = scalar_lea.sflag [#allocation6], %s823_s25  ;;  %s637_s8 = scalar_lea.vmem %s171_s3, 32 }
  0x27   : > { %p638_p12 = scmp.ne.s32.totalorder %s171_s3, %s637_s8  ;;  %s739_s30 = smov [#allocation5]  }
  0x28   : > { %s642_s4 = sshll.u32 %s739_s30, 4  ;;  %s643_s4 = int_to_ptr.vmem [resolvable:$false] %s642_s4 }
  0x29   : > { %p640_p6 = pnand %p638_p12, %p598_p3  ;;  %s644_s6 = scalar_lea.vmem %s643_s4, 64 }
  0x2a   : > { %p645_p1 = scmp.lt.s32.totalorder %s171_s3, %s643_s4  ;;  %p646_p2 = scmp.lt.s32.totalorder %s644_s6, %s637_s8 }
  0x2b   : > { %p641_p7 = pneg %p640_p6 }
  0x2c   : > { %p647_p4 = por %p646_p2, %p645_p1 }
  0x2e   : > { %p648_p10 = pnand %p647_p4, %p641_p7 }
  0x30   : > { %651 = shalt.err (!%p648_p10)
}
  0x31   : > { %532 = dma.hbm_to_vmem [thread:$0]  (!%p832_p0), %s168_s28, 32, %s171_s3, %s157_s7  }
  0x32   : > { %179 = sbr.rel (%p850_p5) target bundleno = 362 (0x16a), region = 28  ;;  %s868_s25 = sand.u32 (!%p850_p5), 1, %s720_s10  }
  0x33   : > { %s508_s15 = sshll.u32 (!%p850_p5), %s868_s25, 3  ;;  %s182_s16 = scalar_lea.sflag (!%p850_p5), [#allocation3], %s868_s25 }
  0x34   : > { %s185_s19 = scalar_lea.vmem (!%p850_p5), [#allocation2], %s508_s15 }
  0x37   : > { %703 = dma.done.wait (%p805_p8), %s182_s16, 128  }
  0x38   : > { %705 = vsyncadd (%p805_p8), %s182_s16, 4294967168  ;;  %s509_s5 = sshll.u32 %s868_s25, 1  ;;  %s191_s18 = scalar_lea.sflag [#allocation6], %s868_s25 }
  0x39   : > { %s194_s20 = scalar_lea.vmem [#allocation5], %s509_s5 }
  0x3a   : > { %707 = dma.done.wait (%p805_p8), %s191_s18, 32  }
  0x3b   : > { %709 = vsyncadd (%p805_p8), %s191_s18, 4294967264  ;;  %vm226_vm0 = vcmask 1043456   ;;  %v221_v0 = vld [vmem:[%s185_s19] sm:$0xff]  ;;  %v271_v18 = vlaneseq  ;;  %v222_v22 = vld [vmem:[%s194_s20] sm:$0x3]  ;;  %vm332_vm4 = vcmask 1040384  }
  0x3c   : > { %v224_v1 = vcombine.high %v221_v0, %v221_v0  ;;  %v227_v2 = vsel %vm226_vm0, %v221_v0, -inf  ;;  %v740_v56 = vmov 1966171168   ;;  %vm299_vm3 = vcmp.ne.s32.totalorder %v222_v22, 255  ;;  %s511_s21 = sshll.u32 %s728_s12, 4  ;;  %s218_s27 = scalar_lea.vmem [#allocation7], %s868_s25 }
  0x3d   : > { %v228_v3 = vrot.slane %v227_v2, 4  ;;  %v272_v20 = vshrl.u32 %v271_v18, 7  ;;  %v306_v57 = vunpack.c.l.s4 %v740_v56  ;;  %s393_s28 = sshll.u32 %s218_s27, 4  ;;  %s905_s8 = scalar_lea.hbm %s949_s2, %s511_s21  ;;  %s394_s28 = int_to_ptr.vmem [resolvable:$true] %s393_s28 }
  0x3e   : > { %v234_v4 = vsel %vm226_vm0, %v224_v1, -inf  ;;  %s380_s30 = scalar_lea.sflag [#allocation4], %s868_s25  ;;  %s652_s12 = scalar_lea.vmem %s394_s28, 16 }
  0x3f   : > { %v229_v5 = vmax.f32 %v227_v2, %v228_v3  ;;  %v235_v6 = vrot.slane %v234_v4, 4  ;;  %v885_v21 = vsub.s32 0, %v272_v20  ;;  %v887_v23 = vsub.s32 1, %v272_v20  ;;  %p653_p8 = scmp.ne.s32.totalorder %s394_s28, %s652_s12  ;;  %s742_s4 = smov [#allocation7]  }
  0x40   : > { %s656_s6 = sshll.u32 %s742_s4, 4  ;;  %s657_s6 = int_to_ptr.vmem [resolvable:$false] %s656_s6 }
  0x41   : > { %v230_v7 = vrot.slane %v229_v5, 2  ;;  %v236_v8 = vmax.f32 %v234_v4, %v235_v6  ;;  %v276_v24 = vrot.slane %v222_v22, %v885_v21  ;;  %v280_v25 = vrot.slane %v222_v22, %v887_v23  ;;  %p654_p0 = pnand %p653_p8, %p809_p9  ;;  %s658_s15 = scalar_lea.vmem %s657_s6, 32 }
  0x42   : > { %p659_p13 = scmp.lt.s32.totalorder %s394_s28, %s657_s6  ;;  %p660_p5 = scmp.lt.s32.totalorder %s658_s15, %s652_s12 }
  0x43   : > { %v231_v9 = vmax.f32 %v229_v5, %v230_v7  ;;  %v237_v10 = vrot.slane %v236_v8, 2  ;;  %vm281_vm1 = vcmp.eq.s32.totalorder %v272_v20, %v276_v24  ;;  %vm282_vm2 = vcmp.eq.s32.totalorder %v272_v20, %v280_v25  ;;  %p655_p3 = pneg %p654_p0 }
  0x44   : > { %v283_v30 = vsel %vm281_vm1, %v221_v0, 0.0  ;;  %v284_v34 = vsel %vm282_vm2, %v224_v1, 0.0  ;;  %v307_v1 = vunpack.c.0.s8 %v306_v57  ;;  %p661_p12 = por %p660_p5, %p659_p13 }
  0x45   : > { %v232_v11 = vrot.slane %v231_v9, 1  ;;  %v238_v12 = vmax.f32 %v236_v8, %v237_v10  ;;  %v285_v35 = vsel %vm226_vm0, %v283_v30, 0.0  ;;  %v292_v38 = vsel %vm226_vm0, %v284_v34, 0.0 }
  0x46   : > { %v286_v41 = vrot.slane %v285_v35, 4  ;;  %v293_v44 = vrot.slane %v292_v38, 4  ;;  %v310_v5 = vsub.s32 %v307_v1, %v272_v20  ;;  %v741_v8 = vmov 0.0   ;;  %p662_p6 = pnand %p661_p12, %p655_p3 }
  0x47   : > { %v233_v13 = vmax.f32 %v231_v9, %v232_v11  ;;  %v239_v14 = vrot.slane %v238_v12, 1  ;;  %v510_v9 = vsel %vm299_vm3, 1.0, %v741_v8 }
  0x48   : > { %v287_v47 = vadd.f32 %v286_v41, %v285_v35  ;;  %v294_v49 = vadd.f32 %v293_v44, %v292_v38  ;;  %v351_v11 = vrot.slane %v510_v9, %v885_v21 }
  0x49   : > { %v240_v15 = vmax.f32 %v238_v12, %v239_v14  ;;  %v355_v12 = vrot.slane %v510_v9, %v887_v23 }
  0x4a   : > { %v288_v50 = vrot.slane %v287_v47, 2  ;;  %v295_v51 = vrot.slane %v294_v49, 2 }
  0x4b   : > { %v243_v16 = vcombine.low %v233_v13, %v240_v15  ;;  %v359_v20 = vsel %vm332_vm4, %v355_v12, 0.0 }
  0x4c   : > { %v289_v52 = vadd.f32 %v288_v50, %v287_v47  ;;  %v296_v53 = vadd.f32 %v295_v51, %v294_v49 }
  0x4d   : > { %v245_v17 = vsub.f32 %v221_v0, %v243_v16 }
  0x4e   : > { %v290_v54 = vrot.slane %v289_v52, 1  ;;  %v297_v55 = vrot.slane %v296_v53, 1 }
  0x4f   : > { %v246_v19 = vmul.f32 1.442695, %v245_v17 }
  0x50   : > { %v291_v60 = vadd.f32 %v290_v54, %v289_v52  ;;  %v298_v0 = vadd.f32 %v297_v55, %v296_v53 }
  0x51   : > { %590 = vpow2.f32 %v246_v19  ;;  %v358_v19 = vsel %vm332_vm4, %v351_v11, 0.0 }
  0x52   : > { %v360_v22 = vadd.f32 %v359_v20, %v358_v19 }
  0x5e   : > { %v591_v26 = vpop.eup %590 }
  0x5f   : > { %v249_v27 = vcombine.high %v591_v26, %v591_v26  ;;  %v251_v28 = vsel %vm226_vm0, %v591_v26, 0.0 }
  0x60   : > { %v252_v29 = vrot.slane %v251_v28, 4 }
  0x61   : > { %v258_v31 = vsel %vm226_vm0, %v249_v27, 0.0 }
  0x62   : > { %v253_v32 = vadd.f32 %v252_v29, %v251_v28  ;;  %v259_v33 = vrot.slane %v258_v31, 4 }
  0x64   : > { %v254_v36 = vrot.slane %v253_v32, 2  ;;  %v260_v37 = vadd.f32 %v259_v33, %v258_v31 }
  0x66   : > { %v255_v39 = vadd.f32 %v254_v36, %v253_v32  ;;  %v261_v40 = vrot.slane %v260_v37, 2 }
  0x68   : > { %v256_v42 = vrot.slane %v255_v39, 1  ;;  %v262_v43 = vadd.f32 %v261_v40, %v260_v37  ;;  %v371_v37 = vand.u32 127, %v271_v18 }
  0x6a   : > { %v257_v45 = vadd.f32 %v256_v42, %v255_v39  ;;  %v263_v46 = vrot.slane %v262_v43, 1  ;;  %vm373_vm5 = vcmp.eq.s32.totalorder %v371_v37, 1  ;;  %vm372_vm6 = vcmp.eq.s32.totalorder %v371_v37, 0 }
  0x6c   : > { %v264_v48 = vadd.f32 %v263_v46, %v262_v43  ;;  %592 = vlog2.f32 %v257_v45 }
  0x6e   : > { %594 = vlog2.f32 %v264_v48 }
  0x79   : > { %v593_v58 = vpop.eup %592 }
  0x7a   : > { %v266_v59 = vmul.f32 0.6931472, %v593_v58 }
  0x7b   : > { %v595_v61 = vpop.eup %594 }
  0x7c   : > { %v268_v62 = vmul.f32 0.6931472, %v595_v61  ;;  %v269_v63 = vadd.f32 %v266_v59, %v233_v13 }
  0x7e   : > { %v270_v2 = vadd.f32 %v268_v62, %v240_v15  ;;  %v300_v3 = vsub.f32 %v269_v63, %v291_v60 }
  0x80   : > { %v301_v4 = vsub.f32 %v270_v2, %v298_v0 }
  0x82   : > { %v304_v6 = vcombine.low %v300_v3, %v301_v4 }
  0x84   : > { %v311_v7 = vrot.slane %v304_v6, %v310_v5 }
  0x86   : > { %v318_v10 = vrot.slane %v311_v7, %v310_v5 }
  0x88   : > { %v320_v14 = vsel %vm299_vm3, %v318_v10, 0.0 }
  0x89   : > { %v325_v13 = vrot.slane %v320_v14, %v885_v21  ;;  %v329_v16 = vrot.slane %v320_v14, %v887_v23 }
  0x8b   : > { %v333_v15 = vsel %vm332_vm4, %v325_v13, 0.0  ;;  %v334_v17 = vsel %vm332_vm4, %v329_v16, 0.0 }
  0x8c   : > { %v335_v24 = vadd.f32 %v334_v17, %v333_v15 }
  0x8e   : > { %336 = vadd.xlane.f32.xlu0 %v335_v24 }
  0x92   : > { %361 = vadd.xlane.f32.xlu0 %v360_v22 }
 0x117   : > { %v337_v25 = vpop.xlane.xlu0 %336 }
 0x118   : > { %v338_v26 = vrot.slane %v337_v25, 4 }
 0x11a   : > { %v339_v27 = vadd.f32 %v338_v26, %v337_v25 }
 0x11b   : > { %v362_v28 = vpop.xlane.xlu0 %361 }
 0x11c   : > { %v340_v29 = vrot.slane %v339_v27, 2  ;;  %v363_v30 = vrot.slane %v362_v28, 4 }
 0x11e   : > { %v364_v31 = vadd.f32 %v363_v30, %v362_v28  ;;  %v341_v21 = vadd.f32 %v340_v29, %v339_v27 }
 0x120   : > { %v365_v32 = vrot.slane %v364_v31, 2  ;;  %v342_v23 = vrot.slane %v341_v21, 1 }
 0x122   : > { %v366_v33 = vadd.f32 %v365_v32, %v364_v31  ;;  %v343_v34 = vadd.f32 %v342_v23, %v341_v21 }
 0x124   : > { %516 = vpush %v343_v34  ;;  %v367_v35 = vrot.slane %v366_v33, 1 }
 0x126   : > { %v368_v36 = vadd.f32 %v367_v35, %v366_v33 }
 0x128   : > { %518 = vpush %v368_v36 }
 0x155   : > { %s517_s26 = spop %516 }
 0x156   : > { %v376_v39 = vstv %s517_s26 }
 0x159   : > { %s519_s29 = spop %518 }
 0x15a   : > { %v374_v38 = vstv %s519_s29 }
 0x15b   : > { %v375_v40 = vsel %vm373_vm5, %v374_v38, 0.0 }
 0x15c   : > { %v377_v41 = vsel %vm372_vm6, %v376_v39, %v375_v40 }
 0x15d   : > { %378 = vst [vmem:[%s218_s27] sm:$0x1] %v377_v41 }
 0x15e   : > { %665 = shalt.err (!%p662_p6)
}
 0x15f   : > { %s666_s16 = scalar_lea.hbm %s905_s8, 16  ;;  %s670_s5 = scalar_lea.hbm %s949_s2, 32 }
 0x160   : > { %p667_p7 = scmp.ne.s32.totalorder %s905_s8, %s666_s16  ;;  %p671_p4 = scmp.lt.s32.totalorder %s905_s8, %s949_s2 }
 0x161   : > { %p672_p10 = scmp.lt.s32.totalorder %s670_s5, %s666_s16 }
 0x162   : > { %p668_p1 = pnand %p667_p7, %p809_p9 }
 0x163   : > { %p673_p8 = por %p672_p10, %p671_p4 }
 0x164   : > { %p669_p2 = pneg %p668_p1 }
 0x166   : > { %p674_p0 = pnand %p673_p8, %p669_p2 }
 0x168   : > { %677 = shalt.err (!%p674_p0)
}
 0x169   : > { %524 = dma.vmem_to_hbm [thread:$0]  (%p809_p9), %s394_s28, 16, %s905_s8, %s380_s30  }
 0x16a PF: > { %s405_s21 = sand.u32 1, %s716_s9   ;;  %p956_p3 = scmp.ge.s32.totalorder %s736_s14, 2 }
 0x16b   : > { %s406_s26 = scalar_lea.sflag [#allocation4], %s405_s21 }
 0x16c   : > { %p534_p13 = pnand %p956_p3, %p816_p11 }
 0x16e   : > { %p535_p5 = pneg %p534_p13 }
 0x170   : > { %711 = dma.done.wait (%p535_p5), %s406_s26, 16  }
 0x171   : > { %713 = vsyncadd (%p535_p5), %s406_s26, 4294967280  ;;  %s21_s14 = sadd.s32 1, %s736_s14   ;;  %s957_s9 = smov %s720_s10 }
 0x172   : > { %p18_p12 = scmp.ge.s32.totalorder %s21_s14, 4   ;;  %s958_s10 = smov %s724_s11 }
 0x173   : > { %s959_s11 = smov %s814_s23  ;;  %s960_s12 = smov %s732_s13 }
 0x174   : > { %s961_s13 = smov %s963_s17  ;;  %20 = sbr.rel (!%p18_p12) target bundleno = 8 (0x8), region = 86 }
 0x179   :  { %410 = vsyncpa [#allocation3], 1 }
 0x17a   :  { %412 = vsyncpa [#allocation3 + $0x1], 1 }
 0x17b   :  { %413 = vsyncpa [#allocation6], 1 }
 0x17c   :  { %415 = vsyncpa [#allocation6 + $0x1], 1 }
 0x17d   :  { %416 = vsyncpa [#allocation4], 1 }
 0x17e   :  { %418 = vsyncpa [#allocation4 + $0x1], 1 }

</bundles_post_ra>
